<compile_context>
chip_gen: v5e
topology: v5e:2x2
jax: 0.10.0
libtpu: 0.0.40
codegen_flags: <defaults>
</compile_context>

<pallas_src>
import jax
import jax.numpy as jnp
from jax.experimental import pallas as pl
from jax.experimental.pallas import tpu as pltpu

# ----------------------------- sizes ---------------------------------------
B = 8            # batch
G_IN = 16        # graph_net.in_size
T_IN = 16        # text_net.in_size
SUB_H = 32       # hidden width inside each frozen sub-network
HIDDEN = 32      # MixedNetwork hidden_size (>0 -> nn.Linear(2, HIDDEN))
LANES = 128      # TPU lane width; everything in the kernel stays lane-dense

# ----------------------- packed parameter slab layout ----------------------
# One (SLAB_ROWS, 128) f32 array; all rows used at full 128-lane width.
R_W1 = 0                       # rows [0, 32):   block-diag layer-1 weights
N_W1 = G_IN + T_IN             #   wg1 at [0:16, 0:32], wt1 at [16:32, 32:64]
R_W2 = R_W1 + N_W1             # rows [32, 160): block-diag layer-2 weights
N_W2 = LANES                   #   wg2 at [+0:32, col 0], wt2 at [+32:64, col 1]
R_B1 = R_W2 + N_W2             # 160: [bg1 | bt1] in cols 0:64
R_B2 = R_B1 + 1                # 161: bg2 in col 0, bt2 in col 1
R_WH0 = R_B2 + 1               # 162: hidden weight row 0 in cols 0:HIDDEN
R_WH1 = R_WH0 + 1              # 163: hidden weight row 1 in cols 0:HIDDEN
R_BH = R_WH1 + 1               # 164: hidden bias in cols 0:HIDDEN
R_WO = R_BH + 1                # 165: output weight (pre-transposed) cols 0:HIDDEN
R_BO = R_WO + 1                # 166: output bias replicated across all lanes
SLAB_ROWS = 168                # pad to a multiple of 8 sublanes


def _sigmoid(x):
    # Exact sigmoid; pl.reciprocal(..., approx=True) would use the EUP vrcp
    # slot but its ~2^-12 error breaks the 1e-5 correctness tolerance here.
    return pl.reciprocal(1.0 + jnp.exp(-x), approx=False)


# ----------------------------- kernel --------------------------------------
def mixed_kernel(x_ref, slab_ref, out_ref):
    x = x_ref[...].astype(jnp.float32)                       # (B, 32)

    # ---- frozen sub-nets, layer 1: one block-diagonal matmul --------------
    w1 = slab_ref[R_W1:R_W1 + N_W1, :]                       # (32, 128)
    b1 = slab_ref[R_B1:R_B1 + 1, :]                          # (1, 128)
    h1 = jnp.maximum(
        jnp.dot(x, w1, preferred_element_type=jnp.float32) + b1, 0.0)  # (B,128)
    # cols 0:32 = graph hidden, cols 32:64 = text hidden, cols 64:128 = 0

    # ---- frozen sub-nets, layer 2: both score-head logits in one matmul ---
    w2 = slab_ref[R_W2:R_W2 + N_W2, :]                       # (128, 128)
    b2 = slab_ref[R_B2:R_B2 + 1, :]                          # (1, 128)
    s2 = jnp.dot(h1, w2, preferred_element_type=jnp.float32) + b2      # (B,128)
    out2 = _sigmoid(s2)                                      # col 0 = out_g, col 1 = out_t

    # ---- MixedNetwork hidden Linear(2, HIDDEN): keep as VPU rank-1 form ----
    out_g = out2[:, 0:1]                                     # (B, 1)
    out_t = out2[:, 1:2]                                     # (B, 1)
    wh0 = slab_ref[R_WH0:R_WH0 + 1, :]                       # (1, 128)
    wh1 = slab_ref[R_WH1:R_WH1 + 1, :]
    bh = slab_ref[R_BH:R_BH + 1, :]
    h = jnp.maximum(out_g * wh0 + out_t * wh1 + bh, 0.0)     # (B, 128); cols >= HIDDEN are 0

    # ---- output Linear(HIDDEN, 1) + sigmoid (bias pre-replicated per lane) -
    wo_t = slab_ref[R_WO:R_WO + 1, :]                        # (1, 128), pre-transposed
    bo = slab_ref[R_BO:R_BO + 1, :]                          # (1, 128), bo in every lane
    logits = jnp.sum(h * wo_t, axis=-1, keepdims=True) + bo  # (B, 128), lane-replicated
    prob = _sigmoid(logits)                                  # (B, 128), lane-replicated

    # ---- single lane-dense output: lane 0 = prob, lane 1 = logits ----------
    lane = jax.lax.broadcasted_iota(jnp.int32, (B, LANES), 1)
    out_ref[...] = jnp.where(lane == 0, prob,
                             jnp.where(lane == 1, logits, 0.0)).astype(out_ref.dtype)


# ----------------------------- wrapper --------------------------------------
def pack_params(p):
    """Pack all frozen / trainable parameters into one lane-dense f32 slab."""
    slab = jnp.zeros((SLAB_ROWS, LANES), jnp.float32)
    # layer-1 block diagonal
    slab = slab.at[R_W1:R_W1 + G_IN, 0:SUB_H].set(p["wg1"])
    slab = slab.at[R_W1 + G_IN:R_W1 + G_IN + T_IN, SUB_H:2 * SUB_H].set(p["wt1"])
    # layer-2 block diagonal (row index == h1 column index)
    slab = slab.at[R_W2:R_W2 + SUB_H, 0:1].set(p["wg2"])
    slab = slab.at[R_W2 + SUB_H:R_W2 + 2 * SUB_H, 1:2].set(p["wt2"])
    # biases of the two sub-nets
    slab = slab.at[R_B1, 0:SUB_H].set(p["bg1"][0])
    slab = slab.at[R_B1, SUB_H:2 * SUB_H].set(p["bt1"][0])
    slab = slab.at[R_B2, 0].set(p["bg2"][0, 0])
    slab = slab.at[R_B2, 1].set(p["bt2"][0, 0])
    # MixedNetwork hidden layer
    slab = slab.at[R_WH0, 0:HIDDEN].set(p["wh"][0])
    slab = slab.at[R_WH1, 0:HIDDEN].set(p["wh"][1])
    slab = slab.at[R_BH, 0:HIDDEN].set(p["bh"][0])
    # MixedNetwork output layer (wo pre-transposed, bo replicated per lane)
    slab = slab.at[R_WO, 0:HIDDEN].set(p["wo"][:, 0])
    slab = slab.at[R_BO, :].set(p["bo"][0, 0])
    return slab


def mixed_network_forward(x, slab):
    """x: (B, G_IN+T_IN); slab: packed params. Returns (prob, logits), each (B, 1)."""
    vmem = pl.BlockSpec(memory_space=pltpu.MemorySpace.VMEM)
    out = pl.pallas_call(
        mixed_kernel,
        out_shape=jax.ShapeDtypeStruct((B, LANES), jnp.float32),
        in_specs=[vmem, vmem],
        out_specs=vmem,
    )(x, slab)
    prob = out[:, 0:1]
    logits = out[:, 1:2]
    return prob, logits


def init_params(key):
    ks = jax.random.split(key, 12)
    scale = 0.1
    return {
        "wg1": scale * jax.random.normal(ks[0], (G_IN, SUB_H), jnp.float32),
        "bg1": scale * jax.random.normal(ks[1], (1, SUB_H), jnp.float32),
        "wg2": scale * jax.random.normal(ks[2], (SUB_H, 1), jnp.float32),
        "bg2": scale * jax.random.normal(ks[3], (1, 1), jnp.float32),
        "wt1": scale * jax.random.normal(ks[4], (T_IN, SUB_H), jnp.float32),
        "bt1": scale * jax.random.normal(ks[5], (1, SUB_H), jnp.float32),
        "wt2": scale * jax.random.normal(ks[6], (SUB_H, 1), jnp.float32),
        "bt2": scale * jax.random.normal(ks[7], (1, 1), jnp.float32),
        "wh": scale * jax.random.normal(ks[8], (2, HIDDEN), jnp.float32),
        "bh": scale * jax.random.normal(ks[9], (1, HIDDEN), jnp.float32),
        "wo": scale * jax.random.normal(ks[10], (HIDDEN, 1), jnp.float32),
        "bo": scale * jax.random.normal(ks[11], (1, 1), jnp.float32),
    }


def reference_forward(x, p):
    """Pure-JAX reference mirroring the PyTorch semantics (unpacked params)."""
    x_g, x_t = x[:, :G_IN], x[:, G_IN:G_IN + T_IN]
    hg = jnp.maximum(x_g @ p["wg1"] + p["bg1"], 0.0)
    og = jax.nn.sigmoid(hg @ p["wg2"] + p["bg2"])
    ht = jnp.maximum(x_t @ p["wt1"] + p["bt1"], 0.0)
    ot = jax.nn.sigmoid(ht @ p["wt2"] + p["bt2"])
    cat = jnp.concatenate([og, ot], axis=1)
    h = jnp.maximum(cat @ p["wh"] + p["bh"], 0.0)
    logits = h @ p["wo"] + p["bo"]
    return jax.nn.sigmoid(logits), logits


if __name__ == "__main__":
    key = jax.random.PRNGKey(0)
    k_x, k_p = jax.random.split(key)
    x = jax.random.normal(k_x, (B, G_IN + T_IN), jnp.float32)
    params = init_params(k_p)
    slab = pack_params(params)

    prob, logits = mixed_network_forward(x, slab)
    prob, logits = jax.block_until_ready((prob, logits))

    prob_ref, logits_ref = reference_forward(x, params)
    assert prob.shape == (B, 1) and logits.shape == (B, 1)
    assert jnp.allclose(prob, prob_ref, atol=1e-5), "prob mismatch"
    assert jnp.allclose(logits, logits_ref, atol=1e-5), "logits mismatch"

    print("KERNEL_OK")
</pallas_src>

<mosaic_0001>
module attributes {stable_mosaic.version = 11 : i64} {
  func.func @mixed_kernel(%arg0: memref<8x32xf32, #tpu.memory_space<vmem>>, %arg1: memref<168x128xf32, #tpu.memory_space<vmem>>, %arg2: memref<8x128xf32, #tpu.memory_space<vmem>>) attributes {dimension_semantics = [], scalar_prefetch = 0 : i64, scratch_operands = 0 : i64, tpu.core_type = #tpu.core_type<tc>} {
    %c0 = arith.constant 0 : index
    %c0_0 = arith.constant 0 : index
    %0 = vector.load %arg0[%c0, %c0_0] : memref<8x32xf32, #tpu.memory_space<vmem>>, vector<8x32xf32>
    %c0_1 = arith.constant 0 : index
    %c0_2 = arith.constant 0 : index
    %1 = vector.load %arg1[%c0_1, %c0_2] : memref<168x128xf32, #tpu.memory_space<vmem>>, vector<32x128xf32>
    %c160 = arith.constant 160 : index
    %c0_3 = arith.constant 0 : index
    %2 = vector.load %arg1[%c160, %c0_3] : memref<168x128xf32, #tpu.memory_space<vmem>>, vector<1x128xf32>
    %cst = arith.constant dense<0.000000e+00> : vector<8x128xf32>
    %3 = tpu.matmul %0, %1, %cst {dimension_numbers = #tpu.dot_dimension_numbers<[1], [0], [0], [1], [0, 0, 1, 1], [], []>} : vector<8x32xf32>, vector<32x128xf32>, vector<8x128xf32> -> vector<8x128xf32>
    %4 = vector.broadcast %2 : vector<1x128xf32> to vector<8x128xf32>
    %5 = arith.addf %3, %4 : vector<8x128xf32>
    %cst_4 = arith.constant 0.000000e+00 : f32
    %6 = vector.broadcast %cst_4 : f32 to vector<8x128xf32>
    %7 = arith.maximumf %5, %6 : vector<8x128xf32>
    %c32 = arith.constant 32 : index
    %c0_5 = arith.constant 0 : index
    %8 = vector.load %arg1[%c32, %c0_5] : memref<168x128xf32, #tpu.memory_space<vmem>>, vector<128x128xf32>
    %c161 = arith.constant 161 : index
    %c0_6 = arith.constant 0 : index
    %9 = vector.load %arg1[%c161, %c0_6] : memref<168x128xf32, #tpu.memory_space<vmem>>, vector<1x128xf32>
    %cst_7 = arith.constant dense<0.000000e+00> : vector<8x128xf32>
    %10 = tpu.matmul %7, %8, %cst_7 {dimension_numbers = #tpu.dot_dimension_numbers<[1], [0], [0], [1], [0, 0, 1, 1], [], []>} : vector<8x128xf32>, vector<128x128xf32>, vector<8x128xf32> -> vector<8x128xf32>
    %11 = vector.broadcast %9 : vector<1x128xf32> to vector<8x128xf32>
    %12 = arith.addf %10, %11 : vector<8x128xf32>
    %cst_8 = arith.constant 0.000000e+00 : f32
    %13 = vector.broadcast %cst_8 : f32 to vector<8x128xf32>
    %14 = arith.subf %13, %12 : vector<8x128xf32>
    %15 = math.exp %14 : vector<8x128xf32>
    %cst_9 = arith.constant 1.000000e+00 : f32
    %16 = vector.broadcast %cst_9 : f32 to vector<8x128xf32>
    %17 = arith.addf %16, %15 : vector<8x128xf32>
    %18 = tpu.reciprocal %17 : vector<8x128xf32> -> vector<8x128xf32>
    %19 = vector.extract_strided_slice %18 {offsets = [0, 0], sizes = [8, 1], strides = [1, 1]} : vector<8x128xf32> to vector<8x1xf32>
    %20 = vector.extract_strided_slice %18 {offsets = [0, 1], sizes = [8, 1], strides = [1, 1]} : vector<8x128xf32> to vector<8x1xf32>
    %c162 = arith.constant 162 : index
    %c0_10 = arith.constant 0 : index
    %21 = vector.load %arg1[%c162, %c0_10] : memref<168x128xf32, #tpu.memory_space<vmem>>, vector<1x128xf32>
    %c163 = arith.constant 163 : index
    %c0_11 = arith.constant 0 : index
    %22 = vector.load %arg1[%c163, %c0_11] : memref<168x128xf32, #tpu.memory_space<vmem>>, vector<1x128xf32>
    %c164 = arith.constant 164 : index
    %c0_12 = arith.constant 0 : index
    %23 = vector.load %arg1[%c164, %c0_12] : memref<168x128xf32, #tpu.memory_space<vmem>>, vector<1x128xf32>
    %24 = vector.broadcast %19 : vector<8x1xf32> to vector<8x128xf32>
    %25 = vector.broadcast %21 : vector<1x128xf32> to vector<8x128xf32>
    %26 = arith.mulf %24, %25 : vector<8x128xf32>
    %27 = vector.broadcast %20 : vector<8x1xf32> to vector<8x128xf32>
    %28 = vector.broadcast %22 : vector<1x128xf32> to vector<8x128xf32>
    %29 = arith.mulf %27, %28 : vector<8x128xf32>
    %30 = arith.addf %26, %29 : vector<8x128xf32>
    %31 = vector.broadcast %23 : vector<1x128xf32> to vector<8x128xf32>
    %32 = arith.addf %30, %31 : vector<8x128xf32>
    %cst_13 = arith.constant 0.000000e+00 : f32
    %33 = vector.broadcast %cst_13 : f32 to vector<8x128xf32>
    %34 = arith.maximumf %32, %33 : vector<8x128xf32>
    %c165 = arith.constant 165 : index
    %c0_14 = arith.constant 0 : index
    %35 = vector.load %arg1[%c165, %c0_14] : memref<168x128xf32, #tpu.memory_space<vmem>>, vector<1x128xf32>
    %c166 = arith.constant 166 : index
    %c0_15 = arith.constant 0 : index
    %36 = vector.load %arg1[%c166, %c0_15] : memref<168x128xf32, #tpu.memory_space<vmem>>, vector<1x128xf32>
    %37 = vector.broadcast %35 : vector<1x128xf32> to vector<8x128xf32>
    %38 = arith.mulf %34, %37 : vector<8x128xf32>
    %cst_16 = arith.constant dense<0.000000e+00> : vector<8xf32>
    %39 = vector.multi_reduction <add>, %38, %cst_16 [1] : vector<8x128xf32> to vector<8xf32>
    %40 = vector.shape_cast %39 : vector<8xf32> to vector<8x1xf32>
    %41 = vector.broadcast %40 : vector<8x1xf32> to vector<8x128xf32>
    %42 = vector.broadcast %36 : vector<1x128xf32> to vector<8x128xf32>
    %43 = arith.addf %41, %42 : vector<8x128xf32>
    %cst_17 = arith.constant 0.000000e+00 : f32
    %44 = vector.broadcast %cst_17 : f32 to vector<8x128xf32>
    %45 = arith.subf %44, %43 : vector<8x128xf32>
    %46 = math.exp %45 : vector<8x128xf32>
    %cst_18 = arith.constant 1.000000e+00 : f32
    %47 = vector.broadcast %cst_18 : f32 to vector<8x128xf32>
    %48 = arith.addf %47, %46 : vector<8x128xf32>
    %49 = tpu.reciprocal %48 : vector<8x128xf32> -> vector<8x128xf32>
    %50 = tpu.iota {dimensions = array<i32: 1>} : vector<8x128xi32>
    %c0_i32 = arith.constant 0 : i32
    %51 = vector.broadcast %c0_i32 : i32 to vector<8x128xi32>
    %52 = arith.cmpi eq, %50, %51 : vector<8x128xi32>
    %c1_i32 = arith.constant 1 : i32
    %53 = vector.broadcast %c1_i32 : i32 to vector<8x128xi32>
    %54 = arith.cmpi eq, %50, %53 : vector<8x128xi32>
    %cst_19 = arith.constant 0.000000e+00 : f32
    %55 = vector.broadcast %cst_19 : f32 to vector<8x128xf32>
    %56 = arith.select %54, %43, %55 : vector<8x128xi1>, vector<8x128xf32>
    %57 = arith.select %52, %49, %56 : vector<8x128xi1>, vector<8x128xf32>
    %c0_20 = arith.constant 0 : index
    %c0_21 = arith.constant 0 : index
    %58 = vector.load %arg2[%c0_20, %c0_21] : memref<8x128xf32, #tpu.memory_space<vmem>>, vector<8x128xf32>
    tpu.vector_store %arg2[%c0_20, %c0_21], %57 {strides = array<i32>} : memref<8x128xf32, #tpu.memory_space<vmem>>, vector<8x128xf32>,
    return
  }
}

</mosaic_0001>

<bundles_post_ra>
// kernel: tpu_custom_call.1
= control target key start
LH: loop header
LB: loop body
LE: loop exit
PB: predicated region body
PF: predicated region fallthrough
CT: control target
= control target key end

     0   :  { %7 = vsyncpa [#allocation3], 0  ;;  %s335_s0 = inlined_call_operand.hbm [shape: f32[8,32], index: 0, kind: input, shape index: {}]   ;;  %s336_s1 = inlined_call_operand.hbm [shape: f32[168,128], index: 1, kind: input, shape index: {}]   ;;  %s337_s2 = inlined_call_operand.hbm [shape: f32[8,128], index: 2, kind: output, shape index: {}]  }
   0x1   :  { %8 = vsyncpa [#allocation6], 0 }
   0x2   :  { %9 = vsyncpa [#allocation4], 0  ;;  %s15_s11 = sshll.u32 %s335_s0, 4  ;;  %s304_s12 = smov [#allocation2]   ;;  %s16_s11 = int_to_ptr.hbm [resolvable:$true] %s15_s11 }
   0x3   :  { %s17_s13 = sshll.u32 %s304_s12, 4  ;;  %s25_s16 = sshll.u32 %s336_s1, 4  ;;  %s18_s13 = int_to_ptr.vmem [resolvable:$true] %s17_s13  ;;  %s26_s16 = int_to_ptr.hbm [resolvable:$true] %s25_s16 }
   0x4   :  { %20 = dma.hbm_to_vmem [thread:$0]  %s16_s11, 128, %s18_s13, [#allocation3]  }
   0x5   :  { %s305_s17 = smov [#allocation5]   ;;  %s306_s19 = smov 128  }
   0x6   :  { %s27_s18 = sshll.u32 %s305_s17, 4  ;;  %s307_s20 = smov 8   ;;  %s28_s18 = int_to_ptr.vmem [resolvable:$true] %s27_s18 }
   0x7   :  { %33 = dma.hbm_to_vmem [thread:$0]  %s26_s16, 2688, %s28_s18, [#allocation6], %s306_s19, %s306_s19, %s307_s20  }
   0x8   :  { %298 = dma.done.wait [#allocation3], 128  }
   0x9   :  { %299 = vsyncadd [#allocation3], 4294967168 }
   0xa   :  { %300 = dma.done.wait [#allocation6], 2688  }
   0xb   :  { %301 = vsyncadd [#allocation6], 4294964608  ;;  %v46_v0 = vld [vmem:[#allocation5 + $0x18] sm:$0xff]  ;;  %v45_v1 = vld [vmem:[#allocation5 + $0x10] sm:$0xff]  ;;  %vm49_vm0 = vcmask 261120   ;;  %v308_v25 = vmov 0   ;;  %v176_v63 = vlaneseq }
   0xc   :  { %65 = vmatpush.msra.mxu0 %v46_v0  ;;  %v89_v2 = vld [vmem:[#allocation5 + $0x98] sm:$0xff]  ;;  %v44_v3 = vld [vmem:[#allocation5 + $0x8] sm:$0xff]  ;;  %v88_v4 = vld [vmem:[#allocation5 + $0x90] sm:$0xff]  ;;  %209 = vset.pattern.permute.xlu0 %v308_v25  ;;  %v309_v43 = vmov 1   ;;  %s310_s0 = smov [#allocation7]   ;;  %s190_s23 = sshll.u32 %s337_s2, 4  ;;  %s191_s23 = int_to_ptr.hbm [resolvable:$true] %s190_s23 }
   0xd   :  { %92 = vmatpush.msra.mxu1 %v89_v2  ;;  %v87_v5 = vld [vmem:[#allocation5 + $0x88] sm:$0xff]  ;;  %v43_v6 = vld [vmem:[#allocation5] sm:$0xff]  ;;  %v42_v7 = vld [vmem:[#allocation2] sm:$0xff]  ;;  %v177_v2 = vand.u32 127, %v176_v63  ;;  %s188_s1 = sshll.u32 %s310_s0, 4  ;;  %s189_s1 = int_to_ptr.vmem [resolvable:$true] %s188_s1 }
   0xe   :  { %66 = vmatpush.msra.mxu0 %v45_v1  ;;  %v86_v8 = vld [vmem:[#allocation5 + $0x80] sm:$0xff]  ;;  %v85_v9 = vld [vmem:[#allocation5 + $0x78] sm:$0xff]  ;;  %v84_v10 = vld [vmem:[#allocation5 + $0x70] sm:$0xff] }
   0xf   :  { %93 = vmatpush.msra.mxu1 %v88_v4  ;;  %v83_v11 = vld [vmem:[#allocation5 + $0x68] sm:$0xff]  ;;  %v82_v12 = vld [vmem:[#allocation5 + $0x60] sm:$0xff]  ;;  %v81_v13 = vld [vmem:[#allocation5 + $0x58] sm:$0xff]  ;;  %vm179_vm6 = vcmp.eq.s32.totalorder %v177_v2, 1  ;;  %vm178_vm9 = vcmp.eq.s32.totalorder %v177_v2, 0 }
  0x10   :  { %67 = vmatpush.msra.mxu0 %v44_v3  ;;  %v80_v14 = vld [vmem:[#allocation5 + $0x50] sm:$0xff]  ;;  %v79_v15 = vld [vmem:[#allocation5 + $0x48] sm:$0xff]  ;;  %v78_v16 = vld [vmem:[#allocation5 + $0x40] sm:$0xff] }
  0x11   :  { %94 = vmatpush.msra.mxu1 %v87_v5  ;;  %v77_v17 = vld [vmem:[#allocation5 + $0x38] sm:$0xff]  ;;  %v76_v18 = vld [vmem:[#allocation5 + $0x30] sm:$0xff]  ;;  %v75_v19 = vld [vmem:[#allocation5 + $0x28] sm:$0xff] }
  0x12   :  { %68 = vmatpush.msra.mxu0 %v43_v6  ;;  %v74_v20 = vld [vmem:[#allocation5 + $0x20] sm:$0xff] }
  0x13   :  { %201 = vmatmul.msk.f32.vlgmr.msra.gmra.mxu0 %vm49_vm0, %v42_v7  ;;  %95 = vmatpush.msra.mxu1 %v86_v8  ;;  %v211_v21 = vld [vmem:[#allocation5 + $0xa0] ss:$0 sm:$0xff]  ;;  %v212_v26 = vld [vmem:[#allocation5 + $0xa1] ss:$0 sm:$0xff]  ;;  %v213_v45 = vld [vmem:[#allocation5 + $0xa2] ss:$0 sm:$0xff] }
  0x14   :  { %v214_v46 = vld [vmem:[#allocation5 + $0xa3] ss:$0 sm:$0xff]  ;;  %v215_v50 = vld [vmem:[#allocation5 + $0xa4] ss:$0 sm:$0xff]  ;;  %v216_v53 = vld [vmem:[#allocation5 + $0xa5] ss:$0 sm:$0xff] }
  0x15   :  { %96 = vmatpush.msra.mxu1 %v85_v9  ;;  %v217_v56 = vld [vmem:[#allocation5 + $0xa6] ss:$0 sm:$0xff] }
  0x17   :  { %97 = vmatpush.msra.mxu1 %v84_v10 }
  0x19   :  { %98 = vmatpush.msra.mxu1 %v83_v11 }
  0x1b   :  { %99 = vmatpush.msra.mxu1 %v82_v12 }
  0x1d   :  { %100 = vmatpush.msra.mxu1 %v81_v13 }
  0x1f   :  { %101 = vmatpush.msra.mxu1 %v80_v14 }
  0x21   :  { %102 = vmatpush.msra.mxu1 %v79_v15 }
  0x23   :  { %103 = vmatpush.msra.mxu1 %v78_v16 }
  0x25   :  { %104 = vmatpush.msra.mxu1 %v77_v17 }
  0x27   :  { %105 = vmatpush.msra.mxu1 %v76_v18 }
  0x29   :  { %106 = vmatpush.msra.mxu1 %v75_v19 }
  0x2b   :  { %107 = vmatpush.msra.mxu1 %v74_v20 }
  0x90   :  { %v70_v22 = vpop.f32.mrf.mxu0 }
  0x91   :  { %v71_v23 = vadd.f32 %v211_v21, %v70_v22 }
  0x93   :  { %v73_v24 = vmax.f32 %v71_v23, 0.0 }
  0x95   :  { %108 = vmatmul.f32.vlgmr.msra.gmra.mxu1 %v73_v24 }
 0x112   :  { %v109_v27 = vpop.f32.mrf.mxu1 }
 0x113   :  { %v110_v28 = vadd.f32 %v212_v26, %v109_v27 }
 0x115   :  { %v112_v29 = vsub.f32 0.0, %v110_v28 }
 0x117   :  { %v113_v30 = vmul.f32 1.442695, %v112_v29 }
 0x119   :  { %218 = vpow2.f32 %v113_v30 }
 0x11f   :  { %v219_v31 = vpop.eup %218 }
 0x120   :  { %v115_v32 = vadd.f32 1.0, %v219_v31 }
 0x122   :  { %220 = vrcp.f32 %v115_v32  ;;  %v127_v36 = vand.u32 2147483648, %v115_v32  ;;  %v125_v38 = vand.u32 2147483647, %v115_v32  ;;  %vm121_vm2 = vweird.f32 %v115_v32 }
 0x124   :  { %v128_v40 = vor.u32 1.1754944e-38, %v127_v36  ;;  %vm126_vm4 = vcmp.eq.f32.partialorder %v125_v38, 8.507059e+37 }
 0x128   :  { %v221_v33 = vpop.eup %220 }
 0x129   :  { %v117_v34 = vmul.f32 %v221_v33, %v115_v32  ;;  %vm122_vm1 = vweird.f32 %v221_v33 }
 0x12a   :  { %vm123_vm3 = vmor %vm121_vm2, %vm122_vm1 }
 0x12b   :  { %v118_v35 = vsub.f32 1.0, %v117_v34 }
 0x12d   :  { %v119_v37 = vmul.f32 %v221_v33, %v118_v35 }
 0x12f   :  { %v120_v39 = vadd.f32 %v221_v33, %v119_v37 }
 0x131   :  { %v124_v41 = vsel %vm123_vm3, %v221_v33, %v120_v39 }
 0x132   :  { %v129_v42 = vsel %vm126_vm4, %v128_v40, %v124_v41 }
 0x133   :  { %135 = vperm.xlu0 %209, %v129_v42  }
 0x13b   :  { %210 = vset.pattern.permute.xlu0 %v309_v43 }
 0x13c   :  { %141 = vperm.xlu0 %210, %v129_v42  }
 0x1a5   :  { %v136_v44 = vpop.permute.xlu0 %135 }
 0x1a6   :  { %v139_v48 = vmul.f32 %v213_v45, %v136_v44 }
 0x1ae   :  { %v142_v47 = vpop.permute.xlu0 %141 }
 0x1af   :  { %v145_v49 = vmul.f32 %v214_v46, %v142_v47 }
 0x1b1   :  { %v146_v51 = vadd.f32 %v145_v49, %v139_v48 }
 0x1b3   :  { %v148_v52 = vadd.f32 %v215_v50, %v146_v51 }
 0x1b5   :  { %v149_v54 = vmax.f32 %v148_v52, 0.0 }
 0x1b7   :  { %v153_v55 = vmul.f32 %v216_v53, %v149_v54 }
 0x1b9   :  { %154 = vadd.xlane.f32.xlu1 %v153_v55 }
 0x22c   :  { %v155_v57 = vpop.xlane.xlu1 %154 }
 0x22d   :  { %v157_v58 = vadd.f32 %v217_v56, %v155_v57 }
 0x22f   :  { %v158_v59 = vsub.f32 0.0, %v157_v58  ;;  %v180_v10 = vsel %vm179_vm6, %v157_v58, 0.0 }
 0x231   :  { %v159_v60 = vmul.f32 1.442695, %v158_v59 }
 0x233   :  { %222 = vpow2.f32 %v159_v60 }
 0x239   :  { %v223_v61 = vpop.eup %222 }
 0x23a   :  { %v161_v62 = vadd.f32 1.0, %v223_v61 }
 0x23c   :  { %224 = vrcp.f32 %v161_v62  ;;  %v173_v4 = vand.u32 2147483648, %v161_v62  ;;  %v171_v6 = vand.u32 2147483647, %v161_v62  ;;  %vm167_vm7 = vweird.f32 %v161_v62 }
 0x23e   :  { %v174_v8 = vor.u32 1.1754944e-38, %v173_v4  ;;  %vm172_vm10 = vcmp.eq.f32.partialorder %v171_v6, 8.507059e+37 }
 0x242   :  { %v225_v0 = vpop.eup %224 }
 0x243   :  { %v163_v1 = vmul.f32 %v225_v0, %v161_v62  ;;  %vm168_vm5 = vweird.f32 %v225_v0 }
 0x244   :  { %vm169_vm8 = vmor %vm167_vm7, %vm168_vm5 }
 0x245   :  { %v164_v3 = vsub.f32 1.0, %v163_v1 }
 0x247   :  { %v165_v5 = vmul.f32 %v225_v0, %v164_v3 }
 0x249   :  { %v166_v7 = vadd.f32 %v225_v0, %v165_v5 }
 0x24b   :  { %v170_v9 = vsel %vm169_vm8, %v225_v0, %v166_v7 }
 0x24c   :  { %v175_v11 = vsel %vm172_vm10, %v174_v8, %v170_v9 }
 0x24d   :  { %v181_v12 = vsel %vm178_vm9, %v175_v11, %v180_v10 }
 0x24e   :  { %182 = vst [vmem:[#allocation7] sm:$0xff] %v181_v12 }
 0x24f   :  { %193 = dma.vmem_to_hbm [thread:$0]  %s189_s1, 128, %s191_s23, [#allocation4]  }
 0x250   :  { %302 = dma.done.wait [#allocation4], 128  }
 0x251   :  { %303 = vsyncadd [#allocation4], 4294967168 }
 0x252   :  { %198 = vsyncpa [#allocation3], 1 }
 0x253   :  { %199 = vsyncpa [#allocation6], 1 }
 0x254   :  { %200 = vsyncpa [#allocation4], 1 }

</bundles_post_ra>
